<compile_context>
chip_gen: v6e
topology: v6e:2x2x1
jax: 0.10.0
libtpu: 0.0.40
codegen_flags: <defaults>
</compile_context>

<pallas_src>
import math

import jax
import jax.numpy as jnp
from jax import lax
from jax.experimental import pallas as pl
from jax.experimental.pallas import tpu as pltpu


# ----------------------------- Pallas kernel --------------------------------
def _aia_kernel(q_ref, k_ref, t_ref, v_ref, we_ref, ts_ref,
                ge_ref, fm_ref, wf_ref, bi_ref, wis_ref, o_ref):
    f32 = jnp.float32
    bf16 = jnp.bfloat16

    Nd, hf = q_ref.shape
    Ns = k_ref.shape[0]
    M = fm_ref.shape[1]

    q = q_ref[...]                                      # (Nd, hf) bf16
    efs = ge_ref[0]                                     # (Nd, Ns) f32 (fc_e/sqrt pre-folded)
    adj = ge_ref[1]                                     # (Nd, Ns) f32 {0,1}

    # ---- msg_fn_prod: e = ((K + fc_e(ef)) . Q) / sqrt(hf)  (scale pre-folded) ----
    qk = lax.dot_general(q, k_ref[...], (((1,), (1,)), ((), ())),
                         preferred_element_type=f32)                    # (Nd, Ns)
    qw = jnp.sum(q.astype(f32) * we_ref[...], axis=-1, keepdims=True)   # (Nd, 1)
    e = qk + efs * qw

    # ---- DGL edge_softmax: masked softmax over incoming edges (src axis) ----
    neg = jnp.where(adj > 0.0, e, f32(-1e30))
    mmax = jnp.max(neg, axis=-1, keepdims=True)
    p = jnp.exp(neg - mmax) * adj
    denom = jnp.maximum(jnp.sum(p, axis=-1, keepdims=True), f32(1e-20))
    ea = (p * pl.reciprocal(denom, approx=True)).astype(bf16)           # (Nd, Ns) bf16

    # ---- update_all(u_mul_e(ft, ea), sum): g = ea @ T ----
    g = lax.dot_general(ea, t_ref[...], (((1,), (0,)), ((), ())),
                        preferred_element_type=f32)                     # (Nd, hf)

    # ---- intensities: fc_i([g, t]) -> sigmoid (time col folded into WF) ----
    xi = jnp.concatenate([g, ts_ref[...]], axis=-1).astype(bf16)        # (Nd, hf+1)
    units = lax.dot_general(xi, wf_ref[...], (((1,), (0,)), ((), ())),
                            preferred_element_type=f32) + bi_ref[...]   # (Nd, hf*M)
    units = 0.5 * jnp.tanh(0.5 * units) + 0.5                           # sigmoid, 1 EUP op

    # ---- msg_fn_inty + update_all(u_mul_e(fv, ee), sum), re-associated:
    #      out[d,f] = sum_m fm[d,m] * sum_s ea[d,s] * fi[s,m] * V[s,f]
    #      (no K=M MXU matmul, no (Nd,Ns) inner/ee temporaries) ----
    wis = wis_ref[...]                      # (M, hf+1): [weight_i/exp(scale) | exp(scale)]
    fm = fm_ref[...]                        # (Nd, M)
    v32 = v_ref[...].astype(f32)            # (Ns, hf)
    acc = jnp.zeros((Nd, hf), f32)
    for mk in range(M):                     # static unroll, M is tiny
        um = units[:, mk * hf:(mk + 1) * hf]                            # (Ns, hf), Ns == Nd
        s_m = jnp.sum(um * wis[mk:mk + 1, :hf], axis=-1, keepdims=True)  # (Ns, 1)
        # overflow-safe softplus: max(x, 0) + log(1 + exp(-|x|))
        sp_m = jnp.maximum(s_m, 0.0) + jnp.log(1.0 + jnp.exp(-jnp.abs(s_m)))
        fi_m = wis[mk:mk + 1, hf:hf + 1] * sp_m                         # (Ns, 1) intensity
        vm = (fi_m * v32).astype(bf16)                                  # (Ns, hf)
        om = lax.dot_general(ea, vm, (((1,), (0,)), ((), ())),
                             preferred_element_type=f32)                # (Nd, hf)
        acc = acc + fm[:, mk:mk + 1] * om
    o_ref[...] = acc.astype(o_ref.dtype)


# ------------------------------ glue / wrapper -------------------------------
def _prepare(params, h_src, h_dst, timespans, event_marks, ef_dense,
             num_heads, num_marks):
    """Plain-JAX layout plumbing: projections, head-major re-layout, folding."""
    N_src, B, _ = h_src.shape
    N_dst = h_dst.shape[0]
    Fout = params['wq'].shape[0]
    H, M = num_heads, num_marks
    hf = Fout // H
    HB = H * B
    bf16 = jnp.bfloat16
    inv_sqrt = 1.0 / math.sqrt(hf)

    def proj_heads(x, w):
        # Linear (no bias) then torch.cat(torch.chunk(., H, dim=2), dim=1); z = h*B + b
        y = jnp.einsum('nbf,of->nbo', x, w).reshape(x.shape[0], B, H, hf)
        return jnp.transpose(y, (2, 1, 0, 3)).reshape(HB, x.shape[0], hf).astype(bf16)

    Q = proj_heads(h_dst, params['wq'])                                # (HB, Nd, hf)
    K = proj_heads(h_src, params['wk'] * inv_sqrt)                     # fold 1/sqrt(hf)
    T = proj_heads(h_src, params['wt'])
    V = proj_heads(h_src, params['wv'])

    we_heads = (params['we'][:, 0] * inv_sqrt).reshape(H, 1, hf)       # fold 1/sqrt(hf)
    WE = jnp.repeat(we_heads, B, axis=0).astype(jnp.float32)           # (HB, 1, hf)

    TS = jnp.tile(jnp.transpose(timespans, (1, 0, 2)),
                  (H, 1, 1)).astype(jnp.float32)                       # (HB, Nd, 1)

    GE = jnp.stack([ef_dense[..., 0], params['adj']],
                   axis=0).astype(jnp.float32)                         # (2, Nd, Ns)
    FM = event_marks.astype(jnp.float32)                               # (Nd, M)

    # fc_i: Linear(hf + 1, hf*M).  Transposed weight keeps the time row (row hf).
    WF = jnp.transpose(params['wi']).astype(bf16)                      # (hf+1, hf*M)
    BI = params['bi'].reshape(1, hf * M).astype(jnp.float32)           # (1, hf*M)

    scale = jnp.exp(params['scale_i'])                                 # (M,)
    WIS = jnp.concatenate([params['weight_i'] / scale[:, None],
                           scale[:, None]], axis=-1).astype(jnp.float32)  # (M, hf+1)

    kin = (Q, K, T, V, WE, TS, GE, FM, WF, BI, WIS)
    return kin, (H, B, N_dst, N_src, hf, M, HB)


def _finalize(out_hb, h_dst, H, B, hf, residual):
    Nd = out_hb.shape[1]
    out = out_hb.reshape(H, B, Nd, hf)
    out = jnp.transpose(out, (2, 1, 0, 3)).reshape(Nd, B, H * hf)
    if residual:
        out = out + h_dst
    return out


def aia_forward(params, h_src, h_dst, timespans, event_marks, ef_dense,
                num_heads, num_marks, residual=True):
    kin, (H, B, Nd, Ns, hf, M, HB) = _prepare(
        params, h_src, h_dst, timespans, event_marks, ef_dense,
        num_heads, num_marks)
    assert Nd == Ns, "module stores dst intensities into srcdata -> needs Nd == Ns"

    in_specs = [
        pl.BlockSpec((None, Nd, hf), lambda z: (z, 0, 0)),   # Q
        pl.BlockSpec((None, Ns, hf), lambda z: (z, 0, 0)),   # K
        pl.BlockSpec((None, Ns, hf), lambda z: (z, 0, 0)),   # T
        pl.BlockSpec((None, Ns, hf), lambda z: (z, 0, 0)),   # V
        pl.BlockSpec((None, 1, hf), lambda z: (z, 0, 0)),    # WE (per-head fc_e weight)
        pl.BlockSpec((None, Nd, 1), lambda z: (z, 0, 0)),    # TS (timespans, pre-tiled over H)
        pl.BlockSpec((2, Nd, Ns), lambda z: (0, 0, 0)),      # GE = [ef ; adj], shared
        pl.BlockSpec((Nd, M), lambda z: (0, 0)),             # FM (event marks), shared
        pl.BlockSpec((hf + 1, hf * M), lambda z: (0, 0)),    # WF (fc_i weight^T incl. time row)
        pl.BlockSpec((1, hf * M), lambda z: (0, 0)),         # BI (fc_i bias)
        pl.BlockSpec((M, hf + 1), lambda z: (0, 0)),         # WIS = [weight_i/exp(sc) | exp(sc)]
    ]
    out_specs = pl.BlockSpec((None, Nd, hf), lambda z: (z, 0, 0))

    out_hb = pl.pallas_call(
        _aia_kernel,
        out_shape=jax.ShapeDtypeStruct((HB, Nd, hf), jnp.float32),
        grid=(HB,),
        in_specs=in_specs,
        out_specs=out_specs,
        compiler_params=pltpu.CompilerParams(
            dimension_semantics=("parallel",),
            vmem_limit_bytes=48 * 1024 * 1024),
    )(*kin)

    return _finalize(out_hb, h_dst, H, B, hf, residual)


# ------------------------- plain-JAX reference check -------------------------
def aia_reference(params, h_src, h_dst, timespans, event_marks, ef_dense,
                  num_heads, num_marks, residual=True):
    """f32 reference computed straight from the raw parameters (mirrors torch)."""
    H, M = num_heads, num_marks
    Fout = params['wq'].shape[0]
    hf = Fout // H
    B = h_src.shape[1]
    HB = H * B
    Nd = h_dst.shape[0]

    def proj(x, w):
        y = jnp.einsum('nbf,of->nbo', x, w).reshape(x.shape[0], B, H, hf)
        return jnp.transpose(y, (2, 1, 0, 3)).reshape(HB, x.shape[0], hf)

    Q, K = proj(h_dst, params['wq']), proj(h_src, params['wk'])
    T, V = proj(h_src, params['wt']), proj(h_src, params['wv'])
    adj = params['adj']
    ef = ef_dense[..., 0]
    we_hb = jnp.repeat(params['we'][:, 0].reshape(H, hf), B, axis=0)    # (HB, hf)

    e = (jnp.einsum('zdf,zsf->zds', Q, K)
         + ef[None] * jnp.einsum('zdf,zf->zd', Q, we_hb)[:, :, None]) / math.sqrt(hf)
    neg = jnp.where(adj[None] > 0, e, jnp.float32(-1e30))
    p = jnp.exp(neg - jnp.max(neg, axis=-1, keepdims=True)) * adj[None]
    ea = p / jnp.maximum(jnp.sum(p, axis=-1, keepdims=True), 1e-20)
    g = jnp.einsum('zds,zsf->zdf', ea, T)

    ts_hb = jnp.tile(jnp.transpose(timespans, (1, 0, 2)), (H, 1, 1))    # (HB, Nd, 1)
    x_i = jnp.concatenate([g, ts_hb], axis=-1)                          # (HB, Nd, hf+1)
    units = jax.nn.sigmoid(jnp.einsum('zdc,kc->zdk', x_i, params['wi']) + params['bi'])
    scale = jnp.exp(params['scale_i'])                                  # (M,)
    s = jnp.einsum('zdmf,mf->zdm', units.reshape(HB, Nd, M, hf),
                   params['weight_i']) / scale
    fi = scale * jnp.logaddexp(s, 0.0)                                  # (HB, Ns, M)

    inner = jnp.einsum('dm,zsm->zds', event_marks, fi)
    out = jnp.einsum('zds,zsf->zdf', inner * ea, V)                     # (HB, Nd, hf)
    return _finalize(out, h_dst, H, B, hf, residual)


# ----------------------------------- main ------------------------------------
if __name__ == "__main__":
    key = jax.random.PRNGKey(0)
    N, B = 8, 2                      # nodes (src == dst), batch
    Fin = Fout = 32                  # in_feats == out_feats (residual)
    H, M = 2, 3                      # num_heads, num_marks
    hf = Fout // H

    ks = jax.random.split(key, 16)
    h_src = jax.random.normal(ks[0], (N, B, Fin), jnp.float32)
    h_dst = jax.random.normal(ks[1], (N, B, Fin), jnp.float32)
    timespans = jax.random.uniform(ks[2], (N, B, 1), dtype=jnp.float32)
    event_marks = jax.nn.one_hot(
        jax.random.randint(ks[3], (N,), 0, M), M, dtype=jnp.float32)    # (N, M)

    adj = (jax.random.uniform(ks[4], (N, N)) < 0.4).astype(jnp.float32)
    adj = jnp.maximum(adj, jnp.eye(N, dtype=jnp.float32))    # ensure in-degree > 0
    ef_dense = jax.random.normal(ks[5], (N, N, 1), jnp.float32) * adj[..., None]

    stddev = 0.02
    bound_wi = math.sqrt(1.0 / hf)   # kaiming_uniform(a=sqrt(5)) on (M, hf)
    params = {
        'wq': stddev * jax.random.normal(ks[6], (Fout, Fin), jnp.float32),
        'wk': stddev * jax.random.normal(ks[7], (Fout, Fin), jnp.float32),
        'wv': stddev * jax.random.normal(ks[8], (Fout, Fin), jnp.float32),
        'wt': stddev * jax.random.normal(ks[9], (Fout, Fin), jnp.float32),
        'we': stddev * jax.random.normal(ks[10], (Fout, 1), jnp.float32),
        'wi': stddev * jax.random.normal(ks[11], (hf * M, hf + 1), jnp.float32),
        'bi': 0.01 * jax.random.normal(ks[12], (hf * M,), jnp.float32),
        'weight_i': jax.random.uniform(ks[13], (M, hf), jnp.float32,
                                       -bound_wi, bound_wi),
        'scale_i': jnp.zeros((M,), jnp.float32),
        'adj': adj,
    }

    out = aia_forward(params, h_src, h_dst, timespans, event_marks, ef_dense,
                      num_heads=H, num_marks=M, residual=True)
    out = jax.block_until_ready(out)

    ref = aia_reference(params, h_src, h_dst, timespans, event_marks, ef_dense,
                        num_heads=H, num_marks=M, residual=True)
    ref = jax.block_until_ready(ref)

    assert out.shape == (N, B, Fout)
    assert bool(jnp.all(jnp.isfinite(out)))
    assert bool(jnp.allclose(out, ref, atol=1e-2, rtol=1e-2))
    print("KERNEL_OK")
</pallas_src>

<mosaic_0001>
module attributes {stable_mosaic.version = 11 : i64} {
  func.func @_aia_kernel(%arg0: i32, %arg1: memref<1x8x16xbf16, #tpu.memory_space<vmem>>, %arg2: memref<1x8x16xbf16, #tpu.memory_space<vmem>>, %arg3: memref<1x8x16xbf16, #tpu.memory_space<vmem>>, %arg4: memref<1x8x16xbf16, #tpu.memory_space<vmem>>, %arg5: memref<1x1x16xf32, #tpu.memory_space<vmem>>, %arg6: memref<1x8x1xf32, #tpu.memory_space<vmem>>, %arg7: memref<2x8x8xf32, #tpu.memory_space<vmem>>, %arg8: memref<8x3xf32, #tpu.memory_space<vmem>>, %arg9: memref<17x48xbf16, #tpu.memory_space<vmem>>, %arg10: memref<1x48xf32, #tpu.memory_space<vmem>>, %arg11: memref<3x17xf32, #tpu.memory_space<vmem>>, %arg12: memref<1x8x16xf32, #tpu.memory_space<vmem>>) attributes {dimension_semantics = [#tpu.dimension_semantics<parallel>], iteration_bounds = array<i64: 4>, scalar_prefetch = 0 : i64, scratch_operands = 0 : i64, tpu.core_type = #tpu.core_type<tc>, window_params = [{transform_indices = @transform_0, window_bounds = array<i64: 1, 8, 16>}, {transform_indices = @transform_1, window_bounds = array<i64: 1, 8, 16>}, {transform_indices = @transform_2, window_bounds = array<i64: 1, 8, 16>}, {transform_indices = @transform_3, window_bounds = array<i64: 1, 8, 16>}, {transform_indices = @transform_4, window_bounds = array<i64: 1, 1, 16>}, {transform_indices = @transform_5, window_bounds = array<i64: 1, 8, 1>}, {pipeline_mode = #tpu.pipeline_mode<synchronous>, transform_indices = @transform_6, window_bounds = array<i64: 2, 8, 8>}, {pipeline_mode = #tpu.pipeline_mode<synchronous>, transform_indices = @transform_7, window_bounds = array<i64: 8, 3>}, {pipeline_mode = #tpu.pipeline_mode<synchronous>, transform_indices = @transform_8, window_bounds = array<i64: 17, 48>}, {pipeline_mode = #tpu.pipeline_mode<synchronous>, transform_indices = @transform_9, window_bounds = array<i64: 1, 48>}, {pipeline_mode = #tpu.pipeline_mode<synchronous>, transform_indices = @transform_10, window_bounds = array<i64: 3, 17>}, {transform_indices = @transform_11, window_bounds = array<i64: 1, 8, 16>}]} {
    %c0 = arith.constant 0 : index
    %c0_0 = arith.constant 0 : index
    %c0_1 = arith.constant 0 : index
    %0 = vector.load %arg1[%c0, %c0_0, %c0_1] : memref<1x8x16xbf16, #tpu.memory_space<vmem>>, vector<1x8x16xbf16>
    %1 = vector.shape_cast %0 : vector<1x8x16xbf16> to vector<8x16xbf16>
    %c0_2 = arith.constant 0 : index
    %c0_3 = arith.constant 0 : index
    %c0_4 = arith.constant 0 : index
    %2 = vector.load %arg7[%c0_2, %c0_3, %c0_4] : memref<2x8x8xf32, #tpu.memory_space<vmem>>, vector<1x8x8xf32>
    %3 = vector.shape_cast %2 : vector<1x8x8xf32> to vector<8x8xf32>
    %c1 = arith.constant 1 : index
    %c0_5 = arith.constant 0 : index
    %c0_6 = arith.constant 0 : index
    %4 = vector.load %arg7[%c1, %c0_5, %c0_6] : memref<2x8x8xf32, #tpu.memory_space<vmem>>, vector<1x8x8xf32>
    %5 = vector.shape_cast %4 : vector<1x8x8xf32> to vector<8x8xf32>
    %c0_7 = arith.constant 0 : index
    %c0_8 = arith.constant 0 : index
    %c0_9 = arith.constant 0 : index
    %6 = vector.load %arg2[%c0_7, %c0_8, %c0_9] : memref<1x8x16xbf16, #tpu.memory_space<vmem>>, vector<1x8x16xbf16>
    %7 = vector.shape_cast %6 : vector<1x8x16xbf16> to vector<8x16xbf16>
    %cst = arith.constant dense<0.000000e+00> : vector<8x8xf32>
    %8 = tpu.matmul %1, %7, %cst {dimension_numbers = #tpu.dot_dimension_numbers<[1], [1], [0], [0], [0, 0, 1, 0], [], []>} : vector<8x16xbf16>, vector<8x16xbf16>, vector<8x8xf32> -> vector<8x8xf32>
    %9 = arith.extf %1 : vector<8x16xbf16> to vector<8x16xf32>
    %c0_10 = arith.constant 0 : index
    %c0_11 = arith.constant 0 : index
    %c0_12 = arith.constant 0 : index
    %10 = vector.load %arg5[%c0_10, %c0_11, %c0_12] : memref<1x1x16xf32, #tpu.memory_space<vmem>>, vector<1x1x16xf32>
    %11 = vector.shape_cast %10 : vector<1x1x16xf32> to vector<1x16xf32>
    %12 = vector.broadcast %11 : vector<1x16xf32> to vector<8x16xf32>
    %13 = arith.mulf %9, %12 : vector<8x16xf32>
    %cst_13 = arith.constant dense<0.000000e+00> : vector<8xf32>
    %14 = vector.multi_reduction <add>, %13, %cst_13 [1] : vector<8x16xf32> to vector<8xf32>
    %15 = vector.shape_cast %14 : vector<8xf32> to vector<8x1xf32>
    %16 = vector.broadcast %15 : vector<8x1xf32> to vector<8x8xf32>
    %17 = arith.mulf %3, %16 : vector<8x8xf32>
    %18 = arith.addf %8, %17 : vector<8x8xf32>
    %cst_14 = arith.constant 0.000000e+00 : f32
    %19 = vector.broadcast %cst_14 : f32 to vector<8x8xf32>
    %20 = arith.cmpf ogt, %5, %19 : vector<8x8xf32>
    %cst_15 = arith.constant -1.000000e+30 : f32
    %21 = vector.broadcast %cst_15 : f32 to vector<8x8xf32>
    %22 = arith.select %20, %18, %21 : vector<8x8xi1>, vector<8x8xf32>
    %cst_16 = arith.constant dense<0xFF800000> : vector<8xf32>
    %23 = vector.multi_reduction <maximumf>, %22, %cst_16 [1] : vector<8x8xf32> to vector<8xf32>
    %24 = vector.shape_cast %23 : vector<8xf32> to vector<8x1xf32>
    %25 = vector.broadcast %24 : vector<8x1xf32> to vector<8x8xf32>
    %26 = arith.subf %22, %25 : vector<8x8xf32>
    %27 = math.exp %26 : vector<8x8xf32>
    %28 = arith.mulf %27, %5 : vector<8x8xf32>
    %cst_17 = arith.constant dense<0.000000e+00> : vector<8xf32>
    %29 = vector.multi_reduction <add>, %28, %cst_17 [1] : vector<8x8xf32> to vector<8xf32>
    %30 = vector.shape_cast %29 : vector<8xf32> to vector<8x1xf32>
    %cst_18 = arith.constant 9.99999968E-21 : f32
    %31 = vector.broadcast %cst_18 : f32 to vector<8x1xf32>
    %32 = arith.maximumf %30, %31 : vector<8x1xf32>
    %33 = tpu.reciprocal %32 {approx = true} : vector<8x1xf32> -> vector<8x1xf32>
    %34 = vector.broadcast %33 : vector<8x1xf32> to vector<8x8xf32>
    %35 = arith.mulf %28, %34 : vector<8x8xf32>
    %36 = arith.truncf %35 : vector<8x8xf32> to vector<8x8xbf16>
    %c0_19 = arith.constant 0 : index
    %c0_20 = arith.constant 0 : index
    %c0_21 = arith.constant 0 : index
    %37 = vector.load %arg3[%c0_19, %c0_20, %c0_21] : memref<1x8x16xbf16, #tpu.memory_space<vmem>>, vector<1x8x16xbf16>
    %38 = vector.shape_cast %37 : vector<1x8x16xbf16> to vector<8x16xbf16>
    %cst_22 = arith.constant dense<0.000000e+00> : vector<8x16xf32>
    %39 = tpu.matmul %36, %38, %cst_22 {dimension_numbers = #tpu.dot_dimension_numbers<[1], [0], [0], [1], [0, 0, 1, 1], [], []>} : vector<8x8xbf16>, vector<8x16xbf16>, vector<8x16xf32> -> vector<8x16xf32>
    %c0_23 = arith.constant 0 : index
    %c0_24 = arith.constant 0 : index
    %c0_25 = arith.constant 0 : index
    %40 = vector.load %arg6[%c0_23, %c0_24, %c0_25] : memref<1x8x1xf32, #tpu.memory_space<vmem>>, vector<1x8x1xf32>
    %41 = vector.shape_cast %40 : vector<1x8x1xf32> to vector<8x1xf32>
    %42 = tpu.concatenate %39, %41 in 1 : vector<8x16xf32>, vector<8x1xf32> -> vector<8x17xf32>
    %43 = arith.truncf %42 : vector<8x17xf32> to vector<8x17xbf16>
    %c0_26 = arith.constant 0 : index
    %c0_27 = arith.constant 0 : index
    %44 = vector.load %arg9[%c0_26, %c0_27] : memref<17x48xbf16, #tpu.memory_space<vmem>>, vector<17x48xbf16>
    %cst_28 = arith.constant dense<0.000000e+00> : vector<8x48xf32>
    %45 = tpu.matmul %43, %44, %cst_28 {dimension_numbers = #tpu.dot_dimension_numbers<[1], [0], [0], [1], [0, 0, 1, 1], [], []>} : vector<8x17xbf16>, vector<17x48xbf16>, vector<8x48xf32> -> vector<8x48xf32>
    %c0_29 = arith.constant 0 : index
    %c0_30 = arith.constant 0 : index
    %46 = vector.load %arg10[%c0_29, %c0_30] : memref<1x48xf32, #tpu.memory_space<vmem>>, vector<1x48xf32>
    %47 = vector.broadcast %46 : vector<1x48xf32> to vector<8x48xf32>
    %48 = arith.addf %45, %47 : vector<8x48xf32>
    %cst_31 = arith.constant 5.000000e-01 : f32
    %49 = vector.broadcast %cst_31 : f32 to vector<8x48xf32>
    %50 = arith.mulf %49, %48 : vector<8x48xf32>
    %51 = math.tanh %50 : vector<8x48xf32>
    %cst_32 = arith.constant 5.000000e-01 : f32
    %52 = vector.broadcast %cst_32 : f32 to vector<8x48xf32>
    %53 = arith.mulf %52, %51 : vector<8x48xf32>
    %cst_33 = arith.constant 5.000000e-01 : f32
    %54 = vector.broadcast %cst_33 : f32 to vector<8x48xf32>
    %55 = arith.addf %53, %54 : vector<8x48xf32>
    %c0_34 = arith.constant 0 : index
    %c0_35 = arith.constant 0 : index
    %56 = vector.load %arg11[%c0_34, %c0_35] : memref<3x17xf32, #tpu.memory_space<vmem>>, vector<3x17xf32>
    %c0_36 = arith.constant 0 : index
    %c0_37 = arith.constant 0 : index
    %57 = vector.load %arg8[%c0_36, %c0_37] : memref<8x3xf32, #tpu.memory_space<vmem>>, vector<8x3xf32>
    %c0_38 = arith.constant 0 : index
    %c0_39 = arith.constant 0 : index
    %c0_40 = arith.constant 0 : index
    %58 = vector.load %arg4[%c0_38, %c0_39, %c0_40] : memref<1x8x16xbf16, #tpu.memory_space<vmem>>, vector<1x8x16xbf16>
    %59 = vector.shape_cast %58 : vector<1x8x16xbf16> to vector<8x16xbf16>
    %60 = arith.extf %59 : vector<8x16xbf16> to vector<8x16xf32>
    %cst_41 = arith.constant 0.000000e+00 : f32
    %61 = vector.broadcast %cst_41 : f32 to vector<8x16xf32>
    %62 = vector.extract_strided_slice %55 {offsets = [0, 0], sizes = [8, 16], strides = [1, 1]} : vector<8x48xf32> to vector<8x16xf32>
    %63 = vector.extract_strided_slice %56 {offsets = [0, 0], sizes = [1, 16], strides = [1, 1]} : vector<3x17xf32> to vector<1x16xf32>
    %64 = vector.broadcast %63 : vector<1x16xf32> to vector<8x16xf32>
    %65 = arith.mulf %62, %64 : vector<8x16xf32>
    %cst_42 = arith.constant dense<0.000000e+00> : vector<8xf32>
    %66 = vector.multi_reduction <add>, %65, %cst_42 [1] : vector<8x16xf32> to vector<8xf32>
    %67 = vector.shape_cast %66 : vector<8xf32> to vector<8x1xf32>
    %cst_43 = arith.constant 0.000000e+00 : f32
    %68 = vector.broadcast %cst_43 : f32 to vector<8x1xf32>
    %69 = arith.maximumf %67, %68 : vector<8x1xf32>
    %70 = math.absf %67 : vector<8x1xf32>
    %cst_44 = arith.constant 0.000000e+00 : f32
    %71 = vector.broadcast %cst_44 : f32 to vector<8x1xf32>
    %72 = arith.subf %71, %70 : vector<8x1xf32>
    %73 = math.exp %72 : vector<8x1xf32>
    %cst_45 = arith.constant 1.000000e+00 : f32
    %74 = vector.broadcast %cst_45 : f32 to vector<8x1xf32>
    %75 = arith.addf %74, %73 : vector<8x1xf32>
    %76 = math.log %75 : vector<8x1xf32>
    %77 = arith.addf %69, %76 : vector<8x1xf32>
    %78 = vector.extract_strided_slice %56 {offsets = [0, 16], sizes = [1, 1], strides = [1, 1]} : vector<3x17xf32> to vector<1x1xf32>
    %79 = vector.broadcast %78 : vector<1x1xf32> to vector<8x1xf32>
    %80 = arith.mulf %79, %77 : vector<8x1xf32>
    %81 = vector.broadcast %80 : vector<8x1xf32> to vector<8x16xf32>
    %82 = arith.mulf %81, %60 : vector<8x16xf32>
    %83 = arith.truncf %82 : vector<8x16xf32> to vector<8x16xbf16>
    %cst_46 = arith.constant dense<0.000000e+00> : vector<8x16xf32>
    %84 = tpu.matmul %36, %83, %cst_46 {dimension_numbers = #tpu.dot_dimension_numbers<[1], [0], [0], [1], [0, 0, 1, 1], [], []>} : vector<8x8xbf16>, vector<8x16xbf16>, vector<8x16xf32> -> vector<8x16xf32>
    %85 = vector.extract_strided_slice %57 {offsets = [0, 0], sizes = [8, 1], strides = [1, 1]} : vector<8x3xf32> to vector<8x1xf32>
    %86 = vector.broadcast %85 : vector<8x1xf32> to vector<8x16xf32>
    %87 = arith.mulf %86, %84 : vector<8x16xf32>
    %88 = arith.addf %61, %87 : vector<8x16xf32>
    %89 = vector.extract_strided_slice %55 {offsets = [0, 16], sizes = [8, 16], strides = [1, 1]} : vector<8x48xf32> to vector<8x16xf32>
    %90 = vector.extract_strided_slice %56 {offsets = [1, 0], sizes = [1, 16], strides = [1, 1]} : vector<3x17xf32> to vector<1x16xf32>
    %91 = vector.broadcast %90 : vector<1x16xf32> to vector<8x16xf32>
    %92 = arith.mulf %89, %91 : vector<8x16xf32>
    %cst_47 = arith.constant dense<0.000000e+00> : vector<8xf32>
    %93 = vector.multi_reduction <add>, %92, %cst_47 [1] : vector<8x16xf32> to vector<8xf32>
    %94 = vector.shape_cast %93 : vector<8xf32> to vector<8x1xf32>
    %cst_48 = arith.constant 0.000000e+00 : f32
    %95 = vector.broadcast %cst_48 : f32 to vector<8x1xf32>
    %96 = arith.maximumf %94, %95 : vector<8x1xf32>
    %97 = math.absf %94 : vector<8x1xf32>
    %cst_49 = arith.constant 0.000000e+00 : f32
    %98 = vector.broadcast %cst_49 : f32 to vector<8x1xf32>
    %99 = arith.subf %98, %97 : vector<8x1xf32>
    %100 = math.exp %99 : vector<8x1xf32>
    %cst_50 = arith.constant 1.000000e+00 : f32
    %101 = vector.broadcast %cst_50 : f32 to vector<8x1xf32>
    %102 = arith.addf %101, %100 : vector<8x1xf32>
    %103 = math.log %102 : vector<8x1xf32>
    %104 = arith.addf %96, %103 : vector<8x1xf32>
    %105 = vector.extract_strided_slice %56 {offsets = [1, 16], sizes = [1, 1], strides = [1, 1]} : vector<3x17xf32> to vector<1x1xf32>
    %106 = vector.broadcast %105 : vector<1x1xf32> to vector<8x1xf32>
    %107 = arith.mulf %106, %104 : vector<8x1xf32>
    %108 = vector.broadcast %107 : vector<8x1xf32> to vector<8x16xf32>
    %109 = arith.mulf %108, %60 : vector<8x16xf32>
    %110 = arith.truncf %109 : vector<8x16xf32> to vector<8x16xbf16>
    %cst_51 = arith.constant dense<0.000000e+00> : vector<8x16xf32>
    %111 = tpu.matmul %36, %110, %cst_51 {dimension_numbers = #tpu.dot_dimension_numbers<[1], [0], [0], [1], [0, 0, 1, 1], [], []>} : vector<8x8xbf16>, vector<8x16xbf16>, vector<8x16xf32> -> vector<8x16xf32>
    %112 = vector.extract_strided_slice %57 {offsets = [0, 1], sizes = [8, 1], strides = [1, 1]} : vector<8x3xf32> to vector<8x1xf32>
    %113 = vector.broadcast %112 : vector<8x1xf32> to vector<8x16xf32>
    %114 = arith.mulf %113, %111 : vector<8x16xf32>
    %115 = arith.addf %88, %114 : vector<8x16xf32>
    %116 = vector.extract_strided_slice %55 {offsets = [0, 32], sizes = [8, 16], strides = [1, 1]} : vector<8x48xf32> to vector<8x16xf32>
    %117 = vector.extract_strided_slice %56 {offsets = [2, 0], sizes = [1, 16], strides = [1, 1]} : vector<3x17xf32> to vector<1x16xf32>
    %118 = vector.broadcast %117 : vector<1x16xf32> to vector<8x16xf32>
    %119 = arith.mulf %116, %118 : vector<8x16xf32>
    %cst_52 = arith.constant dense<0.000000e+00> : vector<8xf32>
    %120 = vector.multi_reduction <add>, %119, %cst_52 [1] : vector<8x16xf32> to vector<8xf32>
    %121 = vector.shape_cast %120 : vector<8xf32> to vector<8x1xf32>
    %cst_53 = arith.constant 0.000000e+00 : f32
    %122 = vector.broadcast %cst_53 : f32 to vector<8x1xf32>
    %123 = arith.maximumf %121, %122 : vector<8x1xf32>
    %124 = math.absf %121 : vector<8x1xf32>
    %cst_54 = arith.constant 0.000000e+00 : f32
    %125 = vector.broadcast %cst_54 : f32 to vector<8x1xf32>
    %126 = arith.subf %125, %124 : vector<8x1xf32>
    %127 = math.exp %126 : vector<8x1xf32>
    %cst_55 = arith.constant 1.000000e+00 : f32
    %128 = vector.broadcast %cst_55 : f32 to vector<8x1xf32>
    %129 = arith.addf %128, %127 : vector<8x1xf32>
    %130 = math.log %129 : vector<8x1xf32>
    %131 = arith.addf %123, %130 : vector<8x1xf32>
    %132 = vector.extract_strided_slice %56 {offsets = [2, 16], sizes = [1, 1], strides = [1, 1]} : vector<3x17xf32> to vector<1x1xf32>
    %133 = vector.broadcast %132 : vector<1x1xf32> to vector<8x1xf32>
    %134 = arith.mulf %133, %131 : vector<8x1xf32>
    %135 = vector.broadcast %134 : vector<8x1xf32> to vector<8x16xf32>
    %136 = arith.mulf %135, %60 : vector<8x16xf32>
    %137 = arith.truncf %136 : vector<8x16xf32> to vector<8x16xbf16>
    %cst_56 = arith.constant dense<0.000000e+00> : vector<8x16xf32>
    %138 = tpu.matmul %36, %137, %cst_56 {dimension_numbers = #tpu.dot_dimension_numbers<[1], [0], [0], [1], [0, 0, 1, 1], [], []>} : vector<8x8xbf16>, vector<8x16xbf16>, vector<8x16xf32> -> vector<8x16xf32>
    %139 = vector.extract_strided_slice %57 {offsets = [0, 2], sizes = [8, 1], strides = [1, 1]} : vector<8x3xf32> to vector<8x1xf32>
    %140 = vector.broadcast %139 : vector<8x1xf32> to vector<8x16xf32>
    %141 = arith.mulf %140, %138 : vector<8x16xf32>
    %142 = arith.addf %115, %141 : vector<8x16xf32>
    %c0_57 = arith.constant 0 : index
    %c0_58 = arith.constant 0 : index
    %c0_59 = arith.constant 0 : index
    %143 = vector.load %arg12[%c0_57, %c0_58, %c0_59] : memref<1x8x16xf32, #tpu.memory_space<vmem>>, vector<1x8x16xf32>
    %144 = vector.shape_cast %143 : vector<1x8x16xf32> to vector<8x16xf32>
    %145 = vector.shape_cast %142 : vector<8x16xf32> to vector<1x8x16xf32>
    tpu.vector_store %arg12[%c0_57, %c0_58, %c0_59], %145 {strides = array<i32>} : memref<1x8x16xf32, #tpu.memory_space<vmem>>, vector<1x8x16xf32>,
    return
  }
  func.func @transform_0(%arg0: i32) -> (i32, i32, i32) {
    %c0_i32 = arith.constant 0 : i32
    %c0_i32_0 = arith.constant 0 : i32
    %c0_i32_1 = arith.constant 0 : i32
    return %arg0, %c0_i32, %c0_i32_0 : i32, i32, i32
  }
  func.func @transform_1(%arg0: i32) -> (i32, i32, i32) {
    %c0_i32 = arith.constant 0 : i32
    %c0_i32_0 = arith.constant 0 : i32
    %c0_i32_1 = arith.constant 0 : i32
    return %arg0, %c0_i32, %c0_i32_0 : i32, i32, i32
  }
  func.func @transform_2(%arg0: i32) -> (i32, i32, i32) {
    %c0_i32 = arith.constant 0 : i32
    %c0_i32_0 = arith.constant 0 : i32
    %c0_i32_1 = arith.constant 0 : i32
    return %arg0, %c0_i32, %c0_i32_0 : i32, i32, i32
  }
  func.func @transform_3(%arg0: i32) -> (i32, i32, i32) {
    %c0_i32 = arith.constant 0 : i32
    %c0_i32_0 = arith.constant 0 : i32
    %c0_i32_1 = arith.constant 0 : i32
    return %arg0, %c0_i32, %c0_i32_0 : i32, i32, i32
  }
  func.func @transform_4(%arg0: i32) -> (i32, i32, i32) {
    %c0_i32 = arith.constant 0 : i32
    %c0_i32_0 = arith.constant 0 : i32
    %c0_i32_1 = arith.constant 0 : i32
    return %arg0, %c0_i32, %c0_i32_0 : i32, i32, i32
  }
  func.func @transform_5(%arg0: i32) -> (i32, i32, i32) {
    %c0_i32 = arith.constant 0 : i32
    %c0_i32_0 = arith.constant 0 : i32
    %c0_i32_1 = arith.constant 0 : i32
    return %arg0, %c0_i32, %c0_i32_0 : i32, i32, i32
  }
  func.func @transform_6(%arg0: i32) -> (i32, i32, i32) {
    %c0_i32 = arith.constant 0 : i32
    %c0_i32_0 = arith.constant 0 : i32
    %c0_i32_1 = arith.constant 0 : i32
    %c0_i32_2 = arith.constant 0 : i32
    return %c0_i32, %c0_i32_0, %c0_i32_1 : i32, i32, i32
  }
  func.func @transform_7(%arg0: i32) -> (i32, i32) {
    %c0_i32 = arith.constant 0 : i32
    %c0_i32_0 = arith.constant 0 : i32
    %c0_i32_1 = arith.constant 0 : i32
    return %c0_i32, %c0_i32_0 : i32, i32
  }
  func.func @transform_8(%arg0: i32) -> (i32, i32) {
    %c0_i32 = arith.constant 0 : i32
    %c0_i32_0 = arith.constant 0 : i32
    %c0_i32_1 = arith.constant 0 : i32
    return %c0_i32, %c0_i32_0 : i32, i32
  }
  func.func @transform_9(%arg0: i32) -> (i32, i32) {
    %c0_i32 = arith.constant 0 : i32
    %c0_i32_0 = arith.constant 0 : i32
    %c0_i32_1 = arith.constant 0 : i32
    return %c0_i32, %c0_i32_0 : i32, i32
  }
  func.func @transform_10(%arg0: i32) -> (i32, i32) {
    %c0_i32 = arith.constant 0 : i32
    %c0_i32_0 = arith.constant 0 : i32
    %c0_i32_1 = arith.constant 0 : i32
    return %c0_i32, %c0_i32_0 : i32, i32
  }
  func.func @transform_11(%arg0: i32) -> (i32, i32, i32) {
    %c0_i32 = arith.constant 0 : i32
    %c0_i32_0 = arith.constant 0 : i32
    %c0_i32_1 = arith.constant 0 : i32
    return %arg0, %c0_i32, %c0_i32_0 : i32, i32, i32
  }
}

</mosaic_0001>

<bundles_post_ra>
// kernel: tpu_custom_call.1
= control target key start
LH: loop header
LB: loop body
LE: loop exit
PB: predicated region body
PF: predicated region fallthrough
CT: control target
= control target key end

     0   :  { %s1927_s0 = inlined_call_operand.vmem [shape: bf16[4,8,16], index: 0, kind: input, shape index: {}]   ;;  %s1928_s1 = inlined_call_operand.vmem [shape: bf16[4,8,16], index: 1, kind: input, shape index: {}]   ;;  %s1929_s2 = inlined_call_operand.vmem [shape: bf16[4,8,16], index: 2, kind: input, shape index: {}]   ;;  %s1930_s3 = inlined_call_operand.hbm [shape: bf16[4,8,16], index: 3, kind: input, shape index: {}]   ;;  %s1931_s4 = inlined_call_operand.hbm [shape: f32[4,1,16], index: 4, kind: input, shape index: {}]   ;;  %s1932_s5 = inlined_call_operand.vmem [shape: f32[4,8,1], index: 5, kind: input, shape index: {}]   ;;  %s1933_s6 = inlined_call_operand.hbm [shape: f32[2,8,8], index: 6, kind: input, shape index: {}]   ;;  %s1934_s7 = inlined_call_operand.vmem [shape: f32[8,3], index: 7, kind: input, shape index: {}]   ;;  %s1935_s8 = inlined_call_operand.vmem [shape: bf16[17,48], index: 8, kind: input, shape index: {}]   ;;  %s1936_s9 = inlined_call_operand.hbm [shape: f32[1,48], index: 9, kind: input, shape index: {}]   ;;  %s1937_s10 = inlined_call_operand.vmem [shape: f32[3,17], index: 10, kind: input, shape index: {}]   ;;  %s1938_s11 = inlined_call_operand.hbm [shape: f32[4,8,16], index: 11, kind: output, shape index: {}]  }
   0x1   :  { %1948 = sst [smem:[#allocation21_spill]] %s1930_s3 }
   0x2   :  { %1949 = sst [smem:[#allocation22_spill]] %s1933_s6 }
   0x3   :  { %1950 = sst [smem:[#allocation23_spill]] %s1936_s9 }
   0x4   :  { %16 = vsyncpa [#allocation3], 0 }
   0x5   :  { %18 = vsyncpa [#allocation3 + $0x1], 0 }
   0x6   :  { %19 = vsyncpa [#allocation6], 0 }
   0x7   :  { %21 = vsyncpa [#allocation6 + $0x1], 0 }
   0x8   :  { %22 = vsyncpa [#allocation9], 0 }
   0x9   :  { %23 = vsyncpa [#allocation4], 0 }
   0xa   :  { %25 = vsyncpa [#allocation4 + $0x1], 0  ;;  %s1612_s17 = smov 0   ;;  %s1614_s18 = smov 0  }
   0xb   :  { %s1616_s19 = smov 0   ;;  %s1618_s20 = smov 0  }
   0xc LB: > { %1951 = sst [smem:[#allocation16_spill]] %s1521_s17  ;;  %s1633_s21 = sadd.s32 4294967295, %s1533_s20   ;;  %s1533_s20 = sphi %s1618_s20, %s1977_s20   ;;  %s1529_s19 = sphi %s1616_s19, %s1979_s19   ;;  %s1525_s18 = sphi %s1614_s18, %s1981_s18   ;;  %s1521_s17 = sphi %s1612_s17, %s1980_s17  }
   0xd   : > { %1952 = sst [smem:[#allocation17_spill]] %s1529_s19  ;;  %s1157_s22 = sadd.s32 4294967294, %s1533_s20  }
   0xe   : > { %p129_p0 = scmp.ne.s32.totalorder %s1525_s18, %s1521_s17  ;;  %p1939_p1 = scmp.eq.s32.totalorder %s1633_s21, 0 }
   0xf   : > { %p316_p3 = scmp.eq.s32.totalorder %s1157_s22, 3  ;;  %p1158_p5 = scmp.ge.s32.totalorder %s1533_s20, 1 }
  0x10   : > { %p1642_p4 = por %p1939_p1, %p129_p0  ;;  %p323_p7 = scmp.lt.s32.totalorder %s1533_s20, 5 }
  0x11   : > { %p1647_p6 = por %p316_p3, %p129_p0  ;;  %s1535_s26 = smov [#allocation7]  }
  0x12   : > { %s1953_s23 = scalar_select %p1642_p4, 1, 0 }
  0x13   : > { %s1954_s24 = scalar_select %p1647_p6, 1, 0 }
  0x14   : > { %p1652_p8 = pnand %p1158_p5, %p323_p7  ;;  %s335_s27 = sshll.u32 %s1535_s26, 4  ;;  %s336_s27 = int_to_ptr.vmem [resolvable:$true] %s335_s27 }
  0x15   : > { %1955 = sst [smem:[#allocation18_spill]] %s1954_s24  ;;  %s1536_s29 = smov [#allocation8]  }
  0x16   : > { %s1956_s25 = scalar_select %p1652_p8, 1, 0 }
  0x17   : > { %p1253_p9 = pneg %p1652_p8  ;;  %s355_s30 = sshll.u32 %s1536_s29, 4  ;;  %s356_s30 = int_to_ptr.vmem [resolvable:$true] %s355_s30 }
  0x18   : > { %s1360_s12 = scalar_lea.vmem %s336_s27, 256  ;;  %p1368_p3 = scmp.lt.s32.totalorder %s336_s27, %s336_s27 }
  0x19   : > { %p1660_p10 = pnand %p1253_p9, %p1939_p1  ;;  %p1361_p12 = scmp.ne.s32.totalorder %s336_s27, %s1360_s12 }
  0x1a   : > { %p1369_p5 = scmp.lt.s32.totalorder %s1360_s12, %s1360_s12 }
  0x1b   : > { %p1351_p11 = pneg %p1660_p10 }
  0x1c   : > { %p1370_p7 = por %p1369_p5, %p1368_p3 }
  0x1d   : > { %p1363_p13 = pnand %p1361_p12, %p1351_p11 }
  0x1f   : > { %p1364_p0 = pneg %p1363_p13 }
  0x21   : > { %p1371_p9 = pnand %p1370_p7, %p1364_p0 }
  0x23   : > { %1374 = shalt.err (!%p1371_p9)
}
  0x24   : > { %s1537_s13 = smov 128   ;;  %s1538_s14 = smov 8  }
  0x25   : > { %s1958_s6 = sld [smem:[#allocation22_spill]]  ;;  %s1386_s22 = scalar_lea.vmem %s356_s30, 16 }
  0x26   : > { %p1387_p1 = scmp.ne.s32.totalorder %s356_s30, %s1386_s22  ;;  %s1393_s26 = scalar_lea.vmem %s356_s30, 32 }
  0x27   : > { %p1394_p2 = scmp.lt.s32.totalorder %s356_s30, %s356_s30  ;;  %p1395_p3 = scmp.lt.s32.totalorder %s1393_s26, %s1386_s22 }
  0x28   : > { %p1389_p12 = pnand %p1387_p1, %p1351_p11 }
  0x29   : > { %p1396_p0 = por %p1395_p3, %p1394_p2 }
  0x2a   : > { %p1390_p13 = pneg %p1389_p12 }
  0x2b   : > { %1256 = dma.hbm_to_vmem [thread:$0]  (!%p1660_p10), %s1958_s6, 256, %s336_s27, [#allocation6], %s1537_s13, %s1537_s13, %s1538_s14  }
  0x2c   : > { %p1397_p5 = pnand %p1396_p0, %p1390_p13 }
  0x2e   : > { %1400 = shalt.err (!%p1397_p5)
}
  0x2f   : > { %s1959_s9 = sld [smem:[#allocation23_spill]]  ;;  %s1683_s27 = sadd.s32 1, %s1533_s20  }
  0x30   : > { %1960 = sst [smem:[#allocation19_spill]] %s1683_s27  ;;  %s116_s13 = sadd.s32 1, %s1529_s19 }
  0x31   : > { %s113_s28 = ssub.s32 %s1533_s20, %s1683_s27  ;;  %p123_p1 = scmp.ne.s32.totalorder %s1529_s19, %s1525_s18 }
  0x32   : > { %p114_p2 = scmp.eq.s32.totalorder %s113_s28, 0  ;;  %p124_p11 = scmp.eq.s32.totalorder %s1533_s20, 0 }
  0x33   : > { %p1961_p7 = scmp.eq.s32.totalorder %s1633_s21, 3  ;;  %p1273_p12 = scmp.lt.s32.totalorder %s1533_s20, 4 }
  0x34   : > { %s1699_s15 = scalar_select %p114_p2, %s1529_s19, %s116_s13  }
  0x35   : > { %1259 = dma.hbm_to_vmem [thread:$0]  (!%p1660_p10), %s1959_s9, 16, %s356_s30, [#allocation9]  }
  0x36   : > { %p1693_p9 = por %p1961_p7, %p123_p1  ;;  %1963 = sst [smem:[#allocation20_spill]] %s1699_s15 }
  0x37   : > { %p125_p13 = por %p124_p11, %p123_p1  ;;  %s1702_s16 = sand.u32 1, %s1529_s19  }
  0x38   : > { %s1962_s14 = scalar_select %p1693_p9, 1, 0 }
  0x39   : > { %s1162_s30 = sshll.u32 %s1702_s16, 2  ;;  %s1163_s22 = sshll.u32 %s1533_s20, 6 }
  0x3a   : > { %s1964_s3 = sld [smem:[#allocation21_spill]]  ;;  %s394_s28 = scalar_lea.vmem [#allocation2], %s1162_s30 }
  0x3b   : > { %s401_s6 = sshll.u32 %s394_s28, 4  ;;  %p1713_p10 = pnand %p1273_p12, %p125_p13  ;;  %s1711_s6 = int_to_ptr.vmem [resolvable:$true] %s401_s6 }
  0x3c   : > { %s391_s15 = scalar_lea.sflag [#allocation3], %s1702_s16 }
  0x3d   : > { %p1403_p0 = pneg %p1713_p10 }
  0x40   : > { %s1709_s12 = scalar_lea.hbm %s1964_s3, %s1163_s22  ;;  %s1406_s26 = scalar_lea.hbm %s1964_s3, 256 }
  0x41   : > { %s1401_s19 = scalar_lea.hbm %s1709_s12, 64  ;;  %p1407_p2 = scmp.lt.s32.totalorder %s1709_s12, %s1964_s3 }
  0x42   : > { %p1402_p3 = scmp.ne.s32.totalorder %s1709_s12, %s1401_s19  ;;  %p1408_p11 = scmp.lt.s32.totalorder %s1406_s26, %s1401_s19 }
  0x44   : > { %p1404_p5 = pnand %p1403_p0, %p1402_p3  ;;  %p1409_p7 = por %p1408_p11, %p1407_p2 }
  0x46   : > { %p1405_p1 = pneg %p1404_p5 }
  0x48   : > { %p1410_p12 = pnand %p1409_p7, %p1405_p1 }
  0x4a   : > { %1413 = shalt.err (!%p1410_p12)
}
  0x4b   : > { %s1414_s9 = scalar_lea.vmem %s1711_s6, 64  ;;  %s1539_s30 = smov [#allocation2]  }
  0x4c   : > { %p1415_p13 = scmp.ne.s32.totalorder %s1711_s6, %s1414_s9  ;;  %s1419_s22 = sshll.u32 %s1539_s30, 4  ;;  %s1420_s22 = int_to_ptr.vmem [resolvable:$false] %s1419_s22 }
  0x4d   : > { %s1421_s27 = scalar_lea.vmem %s1420_s22, 128  ;;  %p1422_p6 = scmp.lt.s32.totalorder %s1711_s6, %s1420_s22 }
  0x4e   : > { %p1417_p3 = pnand %p1415_p13, %p1403_p0  ;;  %p1423_p9 = scmp.lt.s32.totalorder %s1421_s27, %s1414_s9 }
  0x50   : > { %p1418_p5 = pneg %p1417_p3  ;;  %p1424_p4 = por %p1423_p9, %p1422_p6 }
  0x52   : > { %p1425_p2 = pnand %p1424_p4, %p1418_p5 }
  0x54   : > { %1428 = shalt.err (!%p1425_p2)
}
  0x55   : > { %1263 = dma.hbm_to_vmem [thread:$0]  (!%p1713_p10), %s1709_s12, 64, %s1711_s6, %s391_s15  }
  0x56   : > { %s1164_s19 = sshll.u32 %s1533_s20, 4  ;;  %s411_s26 = scalar_lea.vmem [#allocation5], %s1702_s16 }
  0x57   : > { %s418_s29 = sshll.u32 %s411_s26, 4  ;;  %s416_s22 = scalar_lea.hbm %s1931_s4, %s1164_s19  ;;  %s419_s29 = int_to_ptr.vmem [resolvable:$true] %s418_s29 }
  0x58   : > { %s1966_s9 = sand.u32 1, %s1533_s20   ;;  %s1429_s3 = scalar_lea.hbm %s416_s22, 16 }
  0x59   : > { %s409_s27 = scalar_lea.sflag [#allocation6], %s1966_s9  ;;  %p1430_p4 = scmp.ne.s32.totalorder %s416_s22, %s1429_s3 }
  0x5a   : > { %s1434_s6 = scalar_lea.hbm %s1931_s4, 64  ;;  %p1435_p1 = scmp.lt.s32.totalorder %s416_s22, %s1931_s4 }
  0x5b   : > { %p1432_p6 = pnand %p1430_p4, %p1403_p0  ;;  %p1436_p11 = scmp.lt.s32.totalorder %s1434_s6, %s1429_s3 }
  0x5d   : > { %p1433_p9 = pneg %p1432_p6  ;;  %p1437_p7 = por %p1436_p11, %p1435_p1 }
  0x5f   : > { %p1438_p12 = pnand %p1437_p7, %p1433_p9 }
  0x61   : > { %1441 = shalt.err (!%p1438_p12)
}
  0x62   : > { %s1442_s12 = scalar_lea.vmem %s419_s29, 16  ;;  %s1540_s19 = smov [#allocation5]  }
  0x63   : > { %p1443_p13 = scmp.ne.s32.totalorder %s419_s29, %s1442_s12  ;;  %s1447_s26 = sshll.u32 %s1540_s19, 4  ;;  %s1448_s26 = int_to_ptr.vmem [resolvable:$false] %s1447_s26 }
  0x64   : > { %s1449_s17 = scalar_lea.vmem %s1448_s26, 32  ;;  %p1450_p2 = scmp.lt.s32.totalorder %s419_s29, %s1448_s26 }
  0x65   : > { %p1445_p3 = pnand %p1443_p13, %p1403_p0  ;;  %p1451_p4 = scmp.lt.s32.totalorder %s1449_s17, %s1442_s12 }
  0x67   : > { %p1446_p5 = pneg %p1445_p3  ;;  %p1452_p6 = por %p1451_p4, %p1450_p2 }
  0x69   : > { %p1453_p8 = pnand %p1452_p6, %p1446_p5 }
  0x6b   : > { %1456 = shalt.err (!%p1453_p8)
}
  0x6c   : > { %1266 = dma.hbm_to_vmem [thread:$0]  (!%p1713_p10), %s416_s22, 16, %s419_s29, %s409_s27  }
  0x6d   : > { %p1967_p9 = scmp.ne.s32.totalorder %s1956_s25, 0 }
  0x6e   : > { %s1767_s3 = sand.u32 (!%p1967_p9), 1, %s1525_s18   ;;  %p1968_p0 = scmp.ne.s32.totalorder (!%p1967_p9), %s1953_s23, 0 }
  0x6f   : > { %434 = sbr.rel (%p1967_p9) target bundleno = 1711 (0x6af), region = 64  ;;  %s1166_s24 = sshll.u32 (!%p1967_p9), %s1767_s3, 2 }
  0x70   : > { %s437_s28 = scalar_lea.sflag (!%p1967_p9), [#allocation3], %s1767_s3  ;;  %s1771_s30 = scalar_lea.vmem (!%p1967_p9), [#allocation2], %s1166_s24 }
  0x74   : > { %1500 = dma.done.wait (%p1968_p0), %s437_s28, 64  }
  0x75   : > { %1502 = vsyncadd (%p1968_p0), %s437_s28, 4294967232  ;;  %s445_s25 = sand.u32 1, %s1633_s21   ;;  %s448_s29 = scalar_lea.vmem [#allocation5], %s1767_s3 }
  0x76   : > { %s446_s13 = scalar_lea.sflag [#allocation6], %s445_s25 }
  0x77   : > { %1504 = dma.done.wait (%p1968_p0), %s446_s13, 16  }
  0x78   : > { %1506 = vsyncadd (%p1968_p0), %s446_s13, 4294967280  ;;  %p1969_p8 = scmp.eq.s32.totalorder %s1633_s21, 0 }
  0x7a   : > { %1508 = dma.done.wait (%p1969_p8), [#allocation6], 256   ;;  %p1970_p10 = pmov %p1969_p8 }
  0x7b   : > { %p1971_p1 = pmov %p1969_p8 }
  0x7c   : > { %1510 = vsyncadd (%p1970_p10), [#allocation6], 4294967040 }
  0x7d   : > { %1512 = dma.done.wait (%p1971_p1), [#allocation9], 16   ;;  %p1972_p11 = pmov %p1971_p1 }
  0x7e   : > { %p515_p7 = scmp.lt.s32.totalorder %s1633_s21, 3  ;;  %v1541_v0 = vmov 0.0   ;;  %vm1542_vm0 = vmmov 0   ;;  %vm546_vm1 = vcmask 130048   ;;  %v1174_v3 = vld [vmem:[%s448_s29] ss:$0 sm:$0xff]  ;;  %v746_v38 = vlaneseq }
  0x7f   : > { %1514 = vsyncadd (%p1972_p11), [#allocation9], 4294967280  ;;  %1201 = vmatprep.subr.bf16.mxu0 %v1541_v0  ;;  %1203 = vmatprep.mubr.msk.bf16.mxu0 %vm1542_vm0, %v1541_v0  ;;  %v533_v8 = vld [vmem:[#allocation7] sm:$0xff]  ;;  %v535_v11 = vld [vmem:[#allocation7 + $0x8] sm:$0xff]  ;;  %vm599_vm3 = vcmask 64512   ;;  %vm618_vm4 = vcmask 1043456  }
  0x80   : > { %s1796_s23 = scalar_select %p515_p7, %s1633_s21, 3  ;;  %1207 = vmatprep.subr.bf16.mxu1 %v1541_v0  ;;  %1209 = vmatprep.mubr.msk.bf16.mxu1 %vm1542_vm0, %v1541_v0  ;;  %vm597_vm2 = vcmp.gt.f32.partialorder %v535_v11, 0.0  ;;  %vm692_vm5 = vcmask 1040384   ;;  %v1329_v30 = vld [vmem:[%s1935_s8 + $0x8] ss:$0 sps:$4 sm:$0x11]  }
  0x81   : > { %s1543_s29 = smov 16   ;;  %v1544_v31 = vmov 0   ;;  %v1330_v37 = vld [vmem:[%s1935_s8] sm:$0xff]   ;;  %v747_v39 = vshrl.u32 %v746_v38, 7  ;;  %s1545_s16 = smov 32   ;;  %vm688_vm6 = vcmask 138240  }
  0x82   : > { %s1802_s22 = sshll.u32 %s1796_s23, 2  ;;  %s1173_s24 = sshll.u32 %s1796_s23, 3  ;;  %v694_v32 = vsel %vm692_vm5, 65535, %v1544_v31  ;;  %v742_v40 = vld [vmem:[%s1937_s10] sm:$0x7] }
  0x83   : > { %s522_s6 = scalar_lea.vmem %s1928_s1, %s1802_s22  ;;  %s518_s12 = scalar_lea.vmem %s1927_s0, %s1802_s22  ;;  %v696_v35 = vand.u32 %v1329_v30, %v694_v32  ;;  %v823_v41 = vsub.s32 1, %v747_v39  ;;  %v905_v42 = vsub.s32 2, %v747_v39  ;;  %v1177_v52 = vld [vmem:[#allocation8] ss:$0 sm:$0xff]  ;;  %v748_v59 = vsub.s32 0, %v747_v39 }
  0x84   : > { %v536_v1 = vld [vmem:[%s522_s6] sm:$0xf]  ;;  %s526_s17 = scalar_lea.vmem %s1929_s2, %s1802_s22  ;;  %s530_s13 = scalar_lea.vmem %s1932_s5, %s1173_s24 }
  0x85   : > { %v532_v2 = vld [vmem:[%s518_s12] sm:$0xf]  ;;  %v555_v4 = vsel %vm546_vm1, %v536_v1, 0  ;;  %v1848_v43 = vrot.slane %v742_v40, %v823_v41  ;;  %v1850_v44 = vrot.slane %v742_v40, %v905_v42  ;;  %v749_v62 = vrot.slane %v742_v40, %v748_v59  ;;  %s1546_s12 = smov 112   ;;  %s1547_s19 = smov 96  }
  0x86   : > { %v537_v5 = vunpack.c.l.bf16 %v532_v2  ;;  %1202 = vmatpush3.bf16.xpose.msra.mxu0 %v555_v4  ;;  %v614_v25 = vld [vmem:[%s526_s17] sm:$0xf]  ;;  %s1185_s24 = sshll.u32 %s1633_s21, 7  ;;  %s987_s21 = scalar_lea.sflag [#allocation4], %s1767_s3 }
  0x87   : > { %1221 = vmatprep.subr.bf16.mxu0 %v1541_v0  ;;  %v620_v26 = vsel %vm618_vm4, %v614_v25, 0  ;;  %v662_v27 = vld [vmem:[%s530_s13] sm:$0xff]  ;;  %s1884_s22 = scalar_lea.hbm %s1938_s11, %s1185_s24  ;;  %p1973_p13 = scmp.ne.s32.totalorder %s1962_s14, 0 }
  0x88   : > { %v545_v6 = vmul.f32 %v1174_v3, %v537_v5  ;;  %1208 = vmatpush3.bf16.msra.mxu1 %v620_v26  ;;  %s1551_s23 = smov [#allocation10]  }
  0x89   : > { %1213 = vmatprep.subr.bf16.mxu1 %v1541_v0  ;;  %s1461_s27 = sshll.u32 %s1551_s23, 4  ;;  %s1462_s27 = int_to_ptr.vmem [resolvable:$false] %s1461_s27 }
  0x8a   : > { %v547_v7 = vsel %vm546_vm1, %v545_v6, 0.0  ;;  %s1463_s6 = scalar_lea.vmem %s1462_s27, 256 }
  0x8b   : > { %548 = vadd.xlane.f32.xlu0 %v547_v7  ;;  %v1548_v7 = vmov 16  }
  0x8c   : > { %1323 = vset.pattern.permute.xlu0 %v1548_v7  ;;  %1324 = vset.pattern.permute.xlu1 %v1548_v7 }
  0x8d   : > { %1204 = vmatmul.mubr.msk.bf16.vlgmr.msra.gmra.mxu0 %vm546_vm1, %v532_v2 }
  0x8e   : > { %1223 = vmatprep.mubr.msk.bf16.mxu0 %vm1542_vm0, %v1541_v0 }
 0x114   : > { %v549_v9 = vpop.xlane.xlu0 %548 }
 0x115   : > { %v550_v10 = vmul.f32 %v549_v9, %v533_v8 }
 0x14d   : > { %v591_v12 = vpop.f32.mrf.mxu0 }
 0x14e   : > { %v592_v13 = vadd.f32 %v591_v12, %v550_v10 }
 0x14f   : > { %v1205_v14 = vpop.f32.mrf.mxu0 }
 0x150   : > { %v598_v15 = vsel %vm597_vm2, %v592_v13, -1e+30 }
 0x151   : > { %v594_v16 = vpop.f32.mrf.mxu0  ;;  %v600_v17 = vsel %vm599_vm3, %v598_v15, -inf }
 0x152   : > { %601 = vmax.xlane.f32.xlu0 %v600_v17 }
 0x153   : > { %v1206_v18 = vpop.f32.mrf.mxu0 }
 0x168   : > { %826 = vrot.lane.b32.xlu0 %v1848_v43, %s1543_s29 }
 0x1db   : > { %v602_v19 = vpop.xlane.xlu0 %601 }
 0x1dc   : > { %v603_v20 = vsub.f32 %v598_v15, %v602_v19 }
 0x1de   : > { %v604_v21 = vmul.f32 1.442695, %v603_v20 }
 0x1df   : > { %v827_v63 = vpop.permute.xlu0 %826 }
 0x1e0   : > { %1331 = vpow2.f32 %v604_v21 }
 0x1ed   : > { %v1332_v22 = vpop.eup %1331 }
 0x1ee   : > { %v606_v23 = vmul.f32 %v1332_v22, %v535_v11 }
 0x1f0   : > { %v607_v24 = vsel %vm599_vm3, %v606_v23, 0.0 }
 0x1f1   : > { %608 = vadd.xlane.f32.xlu1 %v607_v24 }
 0x202   : > { %664 = vrot.lane.b32.xlu1 %v662_v27, %s1543_s29 }
 0x206   : > { %908 = vrot.lane.b32.xlu1 %v1850_v44, %s1545_s16 }
 0x27a   : > { %v609_v28 = vpop.xlane.xlu1 %608 }
 0x27b   : > { %v610_v29 = vmax.f32 %v609_v28, 1e-20 }
 0x27d   : > { %1333 = vrcp.f32 %v610_v29 }
 0x27e   : > { %v665_v45 = vpop.permute.xlu1 %664 }
 0x282   : > { %v909_v4 = vpop.permute.xlu1 %908 }
 0x28a   : > { %v1334_v33 = vpop.eup %1333 }
 0x28b   : > { %v612_v34 = vmul.f32 %v1334_v33, %v606_v23 }
 0x28d   : > { %v1834_v36 = vpack.c.bf16 %v612_v34, %v612_v34 }
 0x28f   : > { %1210 = vmatmul.mubr.msk.bf16.vlgmr.msra.gmra.mxu1 %vm599_vm3, %v1834_v36 }
 0x290   : > { %1214 = vmatpush3.bf16.msra.mxu1 %v696_v35  ;;  %1217 = vmatprep.mubr.msk.bf16.mxu1 %vm1542_vm0, %v1541_v0 }
 0x291   : > { %1215 = vmatprep.subr.bf16.mxu1 %v1541_v0 }
 0x294   : > { %1216 = vmatpush3.bf16.msra.mxu1 %v1330_v37 }
 0x295   : > { %1227 = vmatprep.subr.bf16.mxu1 %v1541_v0 }
 0x34f   : > { %v656_v46 = vpop.f32.mrf.mxu1 }
 0x350   : > { %v667_v47 = vsel %vm546_vm1, %v656_v46, %v665_v45 }
 0x351   : > { %v668_v48 = vpack.c.bf16 %v667_v47, %v667_v47  ;;  %v1211_v49 = vpop.f32.mrf.mxu1 }
 0x352   : > { %v744_v49 = vld [vmem:[%s1771_s30] sm:$0xf]  ;;  %s1169_s30 = sshll.u32 %s1767_s3, 3 }
 0x353   : > { %v659_v50 = vpop.f32.mrf.mxu1  ;;  %1218 = vmatmul.mubr.msk.bf16.vlgmr.msra.gmra.mxu1 %vm688_vm6, %v668_v48  ;;  %s514_s28 = scalar_lea.vmem [#allocation10], %s1169_s30 }
 0x354   : > { %1229 = vmatprep.mubr.msk.bf16.mxu1 %vm1542_vm0, %v1541_v0  ;;  %v745_v50 = vunpack.c.l.bf16 %v744_v49  ;;  %s1000_s25 = sshll.u32 %s514_s28, 4  ;;  %s1886_s25 = int_to_ptr.vmem [resolvable:$true] %s1000_s25 }
 0x355   : > { %v1212_v51 = vpop.f32.mrf.mxu1  ;;  %s1457_s9 = scalar_lea.vmem %s1886_s25, 128  ;;  %p1464_p2 = scmp.lt.s32.totalorder %s1886_s25, %s1462_s27 }
 0x356   : > { %v743_v51 = vld [vmem:[%s1934_s7] sm:$0xff]  ;;  %p1458_p12 = scmp.ne.s32.totalorder %s1886_s25, %s1457_s9  ;;  %p1465_p4 = scmp.lt.s32.totalorder %s1463_s6, %s1457_s9 }
 0x358   : > { %p1459_p3 = pnand %p1458_p12, %p1973_p13  ;;  %p1466_p6 = por %p1465_p4, %p1464_p2 }
 0x35a   : > { %p1460_p5 = pneg %p1459_p3 }
 0x35c   : > { %p1467_p9 = pnand %p1466_p6, %p1460_p5 }
 0x413   : > { %v732_v53 = vpop.f32.mrf.mxu1 }
 0x414   : > { %v733_v54 = vadd.f32 %v1177_v52, %v732_v53 }
 0x415   : > { %v1219_v55 = vpop.f32.mrf.mxu1 }
 0x416   : > { %v738_v56 = vmul.f32 0.5, %v733_v54  ;;  %v1549_v54 = vmov 2  }
 0x417   : > { %v735_v57 = vpop.f32.mrf.mxu1 }
 0x418   : > { %1335 = vtanh.f32 %v738_v56  ;;  %v1550_v56 = vmov 1  }
 0x419   : > { %v1220_v58 = vpop.f32.mrf.mxu1 }
 0x425   : > { %v1336_v60 = vpop.eup %1335 }
 0x426   : > { %v740_v61 = vmul.f32 0.5, %v1336_v60 }
 0x428   : > { %v741_v1 = vadd.f32 0.5, %v740_v61 }
 0x42a   : > { %v829_v2 = vmul.f32 %v827_v63, %v741_v1  ;;  %v750_v3 = vmul.f32 %v749_v62, %v741_v1  ;;  %v911_v6 = vmul.f32 %v909_v4, %v741_v1 }
 0x42c   : > { %831 = vrot.lane.b32.xlu1 %v829_v2, %s1546_s12  ;;  %v751_v5 = vsel %vm546_vm1, %v750_v3, 0.0 }
 0x42d   : > { %752 = vadd.xlane.f32.xlu0 %v751_v5 }
 0x430   : > { %913 = vrot.lane.b32.xlu1 %v911_v6, %s1547_s19 }
 0x49e   : > { %v832_v8 = vpop.permute.xlu1 %831 }
 0x49f   : > { %v834_v9 = vsel %vm546_vm1, %v832_v8, 0.0 }
 0x4a0   : > { %835 = vadd.xlane.f32.xlu1 %v834_v9 }
 0x4a2   : > { %v914_v10 = vpop.permute.xlu1 %913 }
 0x4a3   : > { %v916_v11 = vsel %vm546_vm1, %v914_v10, 0.0 }
 0x4a4   : > { %917 = vadd.xlane.f32.xlu0 %v916_v11 }
 0x4b6   : > { %v753_v12 = vpop.xlane.xlu0 %752 }
 0x4b7   : > { %v755_v13 = vand.u32 2147483647, %v753_v12  ;;  %v754_v19 = vmax.f32 %v753_v12, 0.0 }
 0x4b9   : > { %v756_v14 = vsub.f32 0.0, %v755_v13 }
 0x4bb   : > { %v757_v15 = vmul.f32 1.442695, %v756_v14 }
 0x4bd   : > { %1337 = vpow2.f32 %v757_v15 }
 0x4ca   : > { %v1338_v16 = vpop.eup %1337 }
 0x4cb   : > { %v759_v17 = vadd.f32 1.0, %v1338_v16 }
 0x4cd   : > { %1339 = vlog2.f32 %v759_v17 }
 0x4da   : > { %v1340_v18 = vpop.eup %1339 }
 0x4db   : > { %v761_v20 = vmul.f32 0.6931472, %v1340_v18 }
 0x4dd   : > { %v762_v21 = vadd.f32 %v761_v20, %v754_v19 }
 0x4df   : > { %v763_v22 = vmul.f32 %v762_v21, %v749_v62 }
 0x4e1   : > { %766 = vperm.xlu0 %1323, %v763_v22  }
 0x4e5   : > { %1328 = vset.pattern.permute.xlu0 %v1549_v54 }
 0x529   : > { %v836_v23 = vpop.xlane.xlu1 %835 }
 0x52a   : > { %v838_v24 = vand.u32 2147483647, %v836_v23  ;;  %v837_v38 = vmax.f32 %v836_v23, 0.0 }
 0x52c   : > { %v839_v25 = vsub.f32 0.0, %v838_v24 }
 0x52d   : > { %v918_v26 = vpop.xlane.xlu0 %917 }
 0x52e   : > { %v840_v27 = vmul.f32 1.442695, %v839_v25  ;;  %v920_v28 = vand.u32 2147483647, %v918_v26  ;;  %v919_v42 = vmax.f32 %v918_v26, 0.0 }
 0x530   : > { %1341 = vpow2.f32 %v840_v27  ;;  %v921_v29 = vsub.f32 0.0, %v920_v28 }
 0x532   : > { %v922_v30 = vmul.f32 1.442695, %v921_v29 }
 0x534   : > { %1343 = vpow2.f32 %v922_v30 }
 0x53d   : > { %v1342_v32 = vpop.eup %1341 }
 0x53e   : > { %v842_v33 = vadd.f32 1.0, %v1342_v32 }
 0x540   : > { %1345 = vlog2.f32 %v842_v33 }
 0x541   : > { %v1344_v34 = vpop.eup %1343 }
 0x542   : > { %v924_v35 = vadd.f32 1.0, %v1344_v34 }
 0x544   : > { %1347 = vlog2.f32 %v924_v35 }
 0x54d   : > { %v1346_v37 = vpop.eup %1345 }
 0x54e   : > { %v844_v39 = vmul.f32 0.6931472, %v1346_v37 }
 0x550   : > { %v845_v40 = vadd.f32 %v844_v39, %v837_v38 }
 0x551   : > { %v1348_v41 = vpop.eup %1347 }
 0x552   : > { %v926_v45 = vmul.f32 0.6931472, %v1348_v41  ;;  %v846_v46 = vmul.f32 %v845_v40, %v1848_v43 }
 0x554   : > { %v927_v47 = vadd.f32 %v926_v45, %v919_v42  ;;  %849 = vperm.xlu1 %1324, %v846_v46  }
 0x556   : > { %v928_v48 = vmul.f32 %v927_v47, %v1850_v44 }
 0x558   : > { %931 = vperm.xlu1 %1324, %v928_v48  }
 0x55c   : > { %v767_v52 = vpop.permute.xlu0 %766  ;;  %1325 = vset.pattern.permute.xlu1 %v1544_v31 }
 0x55d   : > { %v769_v53 = vmul.f32 %v767_v52, %v745_v50  ;;  %816 = vperm.xlu1 %1325, %v743_v51  }
 0x55f   : > { %v770_v55 = vpack.c.bf16 %v769_v53, %v769_v53 }
 0x561   : > { %v772_v43 = vsel %vm618_vm4, %v770_v55, 0  ;;  %1326 = vset.pattern.permute.xlu1 %v1550_v56 }
 0x562   : > { %1222 = vmatpush3.bf16.msra.mxu0 %v772_v43  ;;  %898 = vperm.xlu1 %1326, %v743_v51  }
 0x563   : > { %1233 = vmatprep.subr.bf16.mxu0 %v1541_v0 }
 0x565   : > { %1224 = vmatmul.mubr.msk.bf16.vlgmr.msra.gmra.mxu0 %vm599_vm3, %v1834_v36 }
 0x566   : > { %1235 = vmatprep.mubr.msk.bf16.mxu0 %vm1542_vm0, %v1541_v0  ;;  %1327 = vset.pattern.permute.xlu1 %v1549_v54 }
 0x567   : > { %980 = vperm.xlu1 %1327, %v743_v51  }
 0x5cf   : > { %v850_v31 = vpop.permute.xlu1 %849 }
 0x5d0   : > { %v852_v44 = vmul.f32 %v850_v31, %v745_v50 }
 0x5d2   : > { %v853_v57 = vpack.c.bf16 %v852_v44, %v852_v44 }
 0x5d3   : > { %v932_v58 = vpop.permute.xlu1 %931 }
 0x5d4   : > { %v855_v59 = vsel %vm618_vm4, %v853_v57, 0  ;;  %v934_v60 = vmul.f32 %v932_v58, %v745_v50 }
 0x5d5   : > { %1228 = vmatpush3.bf16.msra.mxu1 %v855_v59 }
 0x5d6   : > { %v935_v61 = vpack.c.bf16 %v934_v60, %v934_v60 }
 0x5d8   : > { %v937_v62 = vsel %vm618_vm4, %v935_v61, 0  ;;  %1230 = vmatmul.mubr.msk.bf16.vlgmr.msra.gmra.mxu1 %vm599_vm3, %v1834_v36  ;;  %v817_v3 = vpop.permute.xlu1 %816 }
 0x5d9   : > { %1234 = vmatpush3.bf16.msra.mxu0 %v937_v62 }
 0x5dc   : > { %1236 = vmatmul.mubr.msk.bf16.vlgmr.msra.gmra.mxu0 %vm599_vm3, %v1834_v36 }
 0x5dd   : > { %v899_v4 = vpop.permute.xlu1 %898 }
 0x5e2   : > { %v981_v8 = vpop.permute.xlu1 %980 }
 0x625   : > { %v808_v0 = vpop.f32.mrf.mxu0 }
 0x626   : > { %v819_v9 = vmul.f32 %v817_v3, %v808_v0 }
 0x627   : > { %v1225_v63 = vpop.f32.mrf.mxu0 }
 0x629   : > { %v811_v1 = vpop.f32.mrf.mxu0 }
 0x62b   : > { %v1226_v2 = vpop.f32.mrf.mxu0 }
 0x698   : > { %v891_v5 = vpop.f32.mrf.mxu1 }
 0x699   : > { %v901_v6 = vmul.f32 %v899_v4, %v891_v5 }
 0x69a   : > { %v1231_v7 = vpop.f32.mrf.mxu1 }
 0x69b   : > { %v902_v36 = vadd.f32 %v901_v6, %v819_v9 }
 0x69c   : > { %v894_v10 = vpop.f32.mrf.mxu1  ;;  %v973_v11 = vpop.f32.mrf.mxu0 }
 0x69d   : > { %v983_v12 = vmul.f32 %v981_v8, %v973_v11 }
 0x69e   : > { %v1232_v13 = vpop.f32.mrf.mxu1  ;;  %v1237_v14 = vpop.f32.mrf.mxu0 }
 0x69f   : > { %v984_v15 = vadd.f32 %v983_v12, %v902_v36 }
 0x6a0   : > { %v976_v16 = vpop.f32.mrf.mxu0 }
 0x6a1   : > { %985 = vst.msk [vmem:[%s514_s28] sm:$0xff] %vm546_vm1, %v984_v15 }
 0x6a2   : > { %v1238_v17 = vpop.f32.mrf.mxu0 }
 0x6a3   : > { %1470 = shalt.err (!%p1467_p9)
}
 0x6a4   : > { %s1471_s15 = scalar_lea.hbm %s1884_s22, 128  ;;  %s1475_s12 = scalar_lea.hbm %s1938_s11, 512 }
 0x6a5   : > { %p1472_p0 = scmp.ne.s32.totalorder %s1884_s22, %s1471_s15  ;;  %p1476_p1 = scmp.lt.s32.totalorder %s1884_s22, %s1938_s11 }
 0x6a6   : > { %p1477_p11 = scmp.lt.s32.totalorder %s1475_s12, %s1471_s15 }
 0x6a7   : > { %p1473_p8 = pnand %p1472_p0, %p1973_p13 }
 0x6a8   : > { %p1478_p7 = por %p1477_p11, %p1476_p1 }
 0x6a9   : > { %p1474_p10 = pneg %p1473_p8 }
 0x6ab   : > { %p1479_p12 = pnand %p1478_p7, %p1474_p10 }
 0x6ad   : > { %1482 = shalt.err (!%p1479_p12)
}
 0x6ae   : > { %1251 = dma.vmem_to_hbm [thread:$0]  (%p1973_p13), %s1886_s25, 128, %s1884_s22, %s987_s21  }
 0x6af PF: > { %s1974_s17 = sld [smem:[#allocation16_spill]]  ;;  %p1276_p3 = scmp.ge.s32.totalorder %s1533_s20, 2 }
 0x6b0   : > { %s1975_s30 = sld [smem:[#allocation18_spill]] }
 0x6b5   : > { %s1012_s24 = sand.u32 1, %s1974_s17  }
 0x6b6   : > { %p1976_p5 = scmp.ne.s32.totalorder %s1975_s30, 0  ;;  %s1013_s28 = scalar_lea.sflag [#allocation4], %s1012_s24 }
 0x6b8   : > { %p1268_p2 = pnand %p1276_p3, %p1976_p5 }
 0x6ba   : > { %p1269_p4 = pneg %p1268_p2 }
 0x6bc   : > { %1516 = dma.done.wait (%p1269_p4), %s1013_s28, 128  }
 0x6bd   : > { %1518 = vsyncadd (%p1269_p4), %s1013_s28, 4294967168  ;;  %s1977_s20 = sld [smem:[#allocation19_spill]]  ;;  %s1980_s17 = smov %s1525_s18 }
 0x6be   : > { %s1978_s13 = sld [smem:[#allocation17_spill]] }
 0x6bf   : > { %s1979_s19 = sld [smem:[#allocation20_spill]] }
 0x6c3   : > { %p28_p6 = scmp.ge.s32.totalorder %s1977_s20, 6  }
 0x6c4   : > { %s1981_s18 = smov %s1978_s13 }
 0x6c5   :  { %30 = sbr.rel (!%p28_p6) target bundleno = 12 (0xc), region = 143 }
 0x6ca   :  { %1018 = vsyncpa [#allocation3], 1 }
 0x6cb   :  { %1020 = vsyncpa [#allocation3 + $0x1], 1 }
 0x6cc   :  { %1021 = vsyncpa [#allocation6], 1 }
 0x6cd   :  { %1023 = vsyncpa [#allocation6 + $0x1], 1 }
 0x6ce   :  { %1024 = vsyncpa [#allocation9], 1 }
 0x6cf   :  { %1025 = vsyncpa [#allocation4], 1 }
 0x6d0   :  { %1027 = vsyncpa [#allocation4 + $0x1], 1 }

</bundles_post_ra>
